<compile_context>
chip_gen: v7x
topology: tpu7x:2x2x1
jax: 0.10.0
libtpu: 0.0.40
codegen_flags: <defaults>
</compile_context>

<pallas_src>
import functools

import numpy as np
import jax
import jax.numpy as jnp
from jax import lax
from jax.experimental import pallas as pl
from jax.experimental.pallas import tpu as pltpu


def xwy_kernel(pw_ref, in_t_ref, out_t_ref, *, vec_len):
    """One batch tile, batch on the lane axis.

    pw_ref    : (V, C)       f32   precomputed products @ W (batch-independent)
    in_t_ref  : (V + C, TB)  f32   IN transposed: rows [0, V) assortments, [V, V+C) features
    out_t_ref : (V, TB)      f32   output transposed
    """
    pw = pw_ref[...]                                   # (V, C)
    assorts = in_t_ref[:vec_len, :]                    # (V, TB)  sublane-aligned split
    cusfs = in_t_ref[vec_len:, :]                      # (C, TB)

    # util[v, b] = sum_c pw[v, c] * cusfs[c, b]
    util = lax.dot_general(
        pw, cusfs,
        dimension_numbers=(((1,), (0,)), ((), ())),
        preferred_element_type=jnp.float32)            # (V, TB)

    # Softmax over V (sublanes, per-lane independent) fused with the assortment
    # mask and the final renorm; the softmax denominator cancels algebraically:
    #   out = assorts * exp(util - m) / sum_v(assorts * exp(util - m))
    m = jnp.max(util, axis=0, keepdims=True)           # (1, TB)
    e = assorts * jnp.exp(util - m)                    # (V, TB)
    denom = jnp.sum(e, axis=0, keepdims=True)          # (1, TB)
    # Exact divide (approx reciprocal previously exceeded rtol=1e-3).
    # Note: an all-zero assortment row gives 0/0 = NaN, matching the reference.
    out_t_ref[...] = e / denom


@functools.partial(jax.jit, static_argnums=(3,), static_argnames=("tile_b",))
def xwy_forward(products, W, IN, vec_len, *, tile_b=32768):
    """Wrapper: precomputes pw = products @ W, grids the batch on the lane axis."""
    B, F = IN.shape
    C = F - vec_len

    # Batch-independent matmul hoisted out of the (batch-gridded) kernel.
    pw = jnp.dot(products.astype(jnp.float32), W.astype(jnp.float32))  # (V, C)

    # Batch-on-lanes layout (layout plumbing, not compute): IN^T (F, B), out^T (V, B).
    in_t = jnp.transpose(IN.astype(jnp.float32))       # (F, B)

    # Lane-dim tiling: a single full-extent block when B fits, otherwise a
    # multiple of 128 (lane constraint).  Partial last tiles are masked by Pallas.
    if B <= tile_b:
        tb = B
    else:
        tb = max(128, (tile_b // 128) * 128)
    grid = (pl.cdiv(B, tb),)

    kernel = functools.partial(xwy_kernel, vec_len=vec_len)
    out_t = pl.pallas_call(
        kernel,
        out_shape=jax.ShapeDtypeStruct((vec_len, B), jnp.float32),
        grid_spec=pltpu.PrefetchScalarGridSpec(
            num_scalar_prefetch=0,
            grid=grid,
            in_specs=[
                pl.BlockSpec((vec_len, C), lambda i: (0, 0)),   # pw, VMEM-resident
                pl.BlockSpec((F, tb), lambda i: (0, i)),        # IN^T batch tile
            ],
            out_specs=pl.BlockSpec((vec_len, tb), lambda i: (0, i)),
        ),
        compiler_params=pltpu.CompilerParams(
            dimension_semantics=("parallel",),     # v7x: shard batch tiles over 2 TCs
            vmem_limit_bytes=32 * 1024 * 1024,     # safe budget on v5e/v6e/v7x
        ),
    )(pw, in_t)

    return jnp.transpose(out_t)                        # (B, V)


def xwy_reference(products, W, IN, vec_len):
    """Pure-JAX reference mirroring the PyTorch forward."""
    assorts = IN[:, :vec_len]
    cusfs = IN[:, vec_len:]
    util = cusfs @ (products @ W).T
    probs = jax.nn.softmax(util, axis=-1)
    x = assorts * probs
    return x / jnp.sum(x, axis=-1, keepdims=True)


def _make_inputs(key, B, vec_len, len_prod, len_cus):
    k_prod, k_w, k_assort, k_cus = jax.random.split(key, 4)
    prod_rest = jax.random.normal(k_prod, (vec_len - 1, len_prod), dtype=jnp.float32)
    products = jnp.concatenate(
        [jnp.zeros((1, len_prod), jnp.float32), prod_rest], axis=0)
    W = jax.random.normal(k_w, (len_prod, len_cus), dtype=jnp.float32)
    assorts = (jax.random.uniform(k_assort, (B, vec_len)) > 0.3).astype(jnp.float32)
    assorts = assorts.at[:, 0].set(1.0)   # guarantee non-empty assortment
    cusfs = jax.random.normal(k_cus, (B, len_cus), dtype=jnp.float32)
    IN = jnp.concatenate([assorts, cusfs], axis=1)   # (B, vec_len + len_cus)
    return products, W, IN


if __name__ == "__main__":
    # Shapes consistent with the module defaults.
    Vec_Len = 8                 # number of products incl. the prepended zero row
    Len_prodFeature = 3
    Len_customerFeature = 5

    key = jax.random.PRNGKey(0)
    k_small, k_big = jax.random.split(key, 2)

    # Case 1: small batch, single block (block dims equal the full array dims).
    products, W, IN = _make_inputs(k_small, 2, Vec_Len,
                                   Len_prodFeature, Len_customerFeature)
    out = jax.block_until_ready(xwy_forward(products, W, IN, Vec_Len))
    ref = xwy_reference(products, W, IN, Vec_Len)
    np.testing.assert_allclose(np.asarray(out), np.asarray(ref),
                               rtol=1e-3, atol=1e-3)

    # Case 2: exercise the lane-tiled batch grid, including a partial last tile
    # (B=320, tb=128 -> 3 grid steps; last step is masked).
    products2, W2, IN2 = _make_inputs(k_big, 320, Vec_Len,
                                      Len_prodFeature, Len_customerFeature)
    out2 = jax.block_until_ready(xwy_forward(products2, W2, IN2, Vec_Len, tile_b=128))
    ref2 = xwy_reference(products2, W2, IN2, Vec_Len)
    np.testing.assert_allclose(np.asarray(out2), np.asarray(ref2),
                               rtol=1e-3, atol=1e-3)

    print("KERNEL_OK")
</pallas_src>

<mosaic_0001>
module attributes {stable_mosaic.version = 11 : i64} {
  func.func @xwy_kernel(%arg0: i32, %arg1: memref<8x5xf32, #tpu.memory_space<vmem>>, %arg2: memref<13x2xf32, #tpu.memory_space<vmem>>, %arg3: memref<8x2xf32, #tpu.memory_space<vmem>>) attributes {dimension_semantics = [#tpu.dimension_semantics<parallel>], iteration_bounds = array<i64: 1>, scalar_prefetch = 0 : i64, scratch_operands = 0 : i64, tpu.core_type = #tpu.core_type<tc>, window_params = [{pipeline_mode = #tpu.pipeline_mode<synchronous>, transform_indices = @transform_0, window_bounds = array<i64: 8, 5>}, {transform_indices = @transform_1, window_bounds = array<i64: 13, 2>}, {transform_indices = @transform_2, window_bounds = array<i64: 8, 2>}]} {
    %c0 = arith.constant 0 : index
    %c0_0 = arith.constant 0 : index
    %0 = vector.load %arg1[%c0, %c0_0] : memref<8x5xf32, #tpu.memory_space<vmem>>, vector<8x5xf32>
    %c0_1 = arith.constant 0 : index
    %c0_2 = arith.constant 0 : index
    %1 = vector.load %arg2[%c0_1, %c0_2] : memref<13x2xf32, #tpu.memory_space<vmem>>, vector<8x2xf32>
    %c8 = arith.constant 8 : index
    %c0_3 = arith.constant 0 : index
    %2 = vector.load %arg2[%c8, %c0_3] : memref<13x2xf32, #tpu.memory_space<vmem>>, vector<5x2xf32>
    %cst = arith.constant dense<0.000000e+00> : vector<8x2xf32>
    %3 = tpu.matmul %0, %2, %cst {dimension_numbers = #tpu.dot_dimension_numbers<[1], [0], [0], [1], [0, 0, 1, 1], [], []>} : vector<8x5xf32>, vector<5x2xf32>, vector<8x2xf32> -> vector<8x2xf32>
    %cst_4 = arith.constant dense<0xFF800000> : vector<2xf32>
    %4 = vector.multi_reduction <maximumf>, %3, %cst_4 [0] : vector<8x2xf32> to vector<2xf32>
    %5 = vector.shape_cast %4 : vector<2xf32> to vector<1x2xf32>
    %6 = vector.broadcast %5 : vector<1x2xf32> to vector<8x2xf32>
    %7 = arith.subf %3, %6 : vector<8x2xf32>
    %8 = math.exp %7 : vector<8x2xf32>
    %9 = arith.mulf %1, %8 : vector<8x2xf32>
    %cst_5 = arith.constant dense<0.000000e+00> : vector<2xf32>
    %10 = vector.multi_reduction <add>, %9, %cst_5 [0] : vector<8x2xf32> to vector<2xf32>
    %11 = vector.shape_cast %10 : vector<2xf32> to vector<1x2xf32>
    %12 = vector.broadcast %11 : vector<1x2xf32> to vector<8x2xf32>
    %13 = arith.divf %9, %12 : vector<8x2xf32>
    %c0_6 = arith.constant 0 : index
    %c0_7 = arith.constant 0 : index
    %14 = vector.load %arg3[%c0_6, %c0_7] : memref<8x2xf32, #tpu.memory_space<vmem>>, vector<8x2xf32>
    tpu.vector_store %arg3[%c0_6, %c0_7], %13 {strides = array<i32>} : memref<8x2xf32, #tpu.memory_space<vmem>>, vector<8x2xf32>,
    return
  }
  func.func @transform_0(%arg0: i32) -> (i32, i32) {
    %c0_i32 = arith.constant 0 : i32
    %c0_i32_0 = arith.constant 0 : i32
    %c0_i32_1 = arith.constant 0 : i32
    return %c0_i32, %c0_i32_0 : i32, i32
  }
  func.func @transform_1(%arg0: i32) -> (i32, i32) {
    %c0_i32 = arith.constant 0 : i32
    %c0_i32_0 = arith.constant 0 : i32
    return %c0_i32, %arg0 : i32, i32
  }
  func.func @transform_2(%arg0: i32) -> (i32, i32) {
    %c0_i32 = arith.constant 0 : i32
    %c0_i32_0 = arith.constant 0 : i32
    return %c0_i32, %arg0 : i32, i32
  }
}

</mosaic_0001>

<bundles_post_ra>
// kernel: xwy_forward.1
= control target key start
LH: loop header
LB: loop body
LE: loop exit
PB: predicated region body
PF: predicated region fallthrough
CT: control target
= control target key end

     0   :  { %vm18_vm0 = vcmask 1044480   ;;  %vm14_vm1 = vcmask 39936   ;;  %v133_v0 = vmov 0.0   ;;  %vm134_vm2 = vmmov 0   ;;  %s165_s1 = inlined_call_operand.vmem [shape: f32[13,2], index: 1, kind: input, shape index: {}]   ;;  %s166_s0 = inlined_call_operand.vmem [shape: f32[8,5], index: 0, kind: input, shape index: {}]   ;;  %s167_s2 = inlined_call_operand.vmem [shape: f32[8,2], index: 2, kind: output, shape index: {}]  }
   0x1   :  { %122 = vmatprep.subr.mxu0 %v133_v0  ;;  %v13_v1 = vld [vmem:[%s165_s1 + $0x8] sm:$0x1f]  ;;  %124 = vmatprep.mubr.msk.f32.mxu0 %vm134_vm2, %v133_v0  ;;  %v11_v2 = vld [vmem:[%s166_s0] sm:$0xff]  ;;  %vm92_vm3 = vcmask 15360  }
   0x2   :  { %123 = vmatpush3.msk.msra.mxu0 %vm18_vm0, %v13_v1  ;;  %v12_v14 = vld [vmem:[%s165_s1] sm:$0xff] }
   0x3   :  { %125 = vmatmul.mubr.msk.f32.vlgmr.msra.gmra.mrb[0].mxu0 %vm14_vm1, %v11_v2 }
  0xd6   :  { %v88_v3 = vpop.f32.mrb[0].mxu0 }
  0xd7   :  { %v93_v4 = vsel %vm92_vm3, %v88_v3, -inf  ;;  %v126_v5 = vpop.f32.mrb[1].mxu0 }
  0xd8   :  { %v94_v6 = vrot.slane %v93_v4, 4 }
  0xda   :  { %v95_v7 = vmax.f32 %v93_v4, %v94_v6 }
  0xdc   :  { %v96_v8 = vrot.slane %v95_v7, 2 }
  0xde   :  { %v97_v9 = vmax.f32 %v95_v7, %v96_v8 }
  0xe0   :  { %v98_v10 = vrot.slane %v97_v9, 1 }
  0xe2   :  { %v99_v11 = vmax.f32 %v97_v9, %v98_v10 }
  0xe4   :  { %v100_v12 = vsub.f32 %v88_v3, %v99_v11 }
  0xe6   :  { %v101_v13 = vmul.f32 1.442695, %v100_v12 }
  0xe8   :  { %129 = vpow2.f32 %v101_v13 }
  0xf2   :  { %v130_v15 = vpop.eup %129 }
  0xf3   :  { %v103_v16 = vmul.f32 %v130_v15, %v12_v14 }
  0xf5   :  { %v104_v17 = vsel %vm92_vm3, %v103_v16, 0.0 }
  0xf6   :  { %v105_v18 = vrot.slane %v104_v17, 4 }
  0xf8   :  { %v106_v19 = vadd.f32 %v105_v18, %v104_v17 }
  0xfa   :  { %v107_v20 = vrot.slane %v106_v19, 2 }
  0xfc   :  { %v108_v21 = vadd.f32 %v107_v20, %v106_v19 }
  0xfe   :  { %v109_v22 = vrot.slane %v108_v21, 1 }
 0x100   :  { %v110_v23 = vadd.f32 %v109_v22, %v108_v21 }
 0x102   :  { %131 = vrcp.f32 %v110_v23 }
 0x10c   :  { %v132_v24 = vpop.eup %131 }
 0x10d   :  { %v112_v25 = vmul.f32 %v132_v24, %v103_v16 }
 0x10f   :  { %113 = vst.msk [vmem:[%s167_s2] sm:$0xff] %vm92_vm3, %v112_v25 }

</bundles_post_ra>
